<compile_context>
chip_gen: v7x
topology: tpu7x:2x2x1
jax: 0.10.0
libtpu: 0.0.40
codegen_flags: <defaults>
</compile_context>

<pallas_src>
import numpy as np
import jax
import jax.numpy as jnp
from jax.experimental import pallas as pl
from jax.experimental.pallas import tpu as pltpu

PP_SIZE = (1, 3)
PP_D = sum(s * s for s in PP_SIZE)          # 10
PMAT_LANES = 128                            # lane-padded pooled-feature width
BN_EPS = 1e-5
_HIGHEST = jax.lax.Precision.HIGHEST


# ---------------------------------------------------------------------------
# Host-side glue: per-channel adaptive-pool matrix (HW, 128) -- tiny, shared by all C.
# ---------------------------------------------------------------------------
def _adaptive_pool_matrix(H, W):
    cols = []
    for s in PP_SIZE:
        mat = np.zeros((H * W, s * s), dtype=np.float32)
        for i in range(s):
            hs, he = (i * H) // s, -(-((i + 1) * H) // s)     # floor / ceil bins
            for j in range(s):
                ws, we = (j * W) // s, -(-((j + 1) * W) // s)
                area = float((he - hs) * (we - ws))
                for h in range(hs, he):
                    for w in range(ws, we):
                        mat[h * W + w, i * s + j] = 1.0 / area
        cols.append(mat)
    full = np.concatenate(cols, axis=1)                        # (HW, PP_D)
    padded = np.zeros((H * W, PMAT_LANES), dtype=np.float32)   # lane-dense output
    padded[:, :PP_D] = full
    return padded


# ---------------------------------------------------------------------------
# Kernels
# ---------------------------------------------------------------------------
def _pool_kernel(x_ref, y_ref, pmat_ref, zp_ref):
    # rows = (b, c) pairs, lanes = spatial positions; pooled = U-rows @ pmat
    u = x_ref[...].astype(jnp.float32) + y_ref[...].astype(jnp.float32)
    zp_ref[...] = jnp.dot(u, pmat_ref[...], precision=_HIGHEST,
                          preferred_element_type=jnp.float32)


def _fuse_kernel(x_ref, y_ref, wx_ref, wy_ref, o_ref):
    # per-row scalar attention weight (f32) broadcast over the lane (spatial) axis
    xv = x_ref[...].astype(jnp.float32)
    yv = y_ref[...].astype(jnp.float32)
    o_ref[...] = (xv * wx_ref[...] + yv * wy_ref[...]).astype(o_ref.dtype)


# ---------------------------------------------------------------------------
# Tiling helpers
# ---------------------------------------------------------------------------
def _vmem_config():
    """(vmem_limit_bytes, streaming budget) gated on the TPU generation."""
    try:
        cap = int(pltpu.get_tpu_info().vmem_capacity_bytes)
    except Exception:
        cap = 64 << 20                       # conservative (v7x-sized) default
    if cap >= (100 << 20):                   # v5e / v6e: 128 MiB physical per core
        return 96 << 20, 48 << 20
    return 48 << 20, 24 << 20                # v7x (64 MiB / TC) or unknown


def _pick_row_tile(R, bytes_per_row, budget, min_steps=4):
    """Largest row tile that (a) divides R exactly (no jnp.pad of activations),
    (b) is a multiple of 8 or equal to R, (c) fits the double-buffered budget and
    (d) leaves >= min_steps grid steps when the array is big enough."""
    divs = [d for d in range(8, R + 1, 8) if R % d == 0]
    if not divs:
        divs = [R]                           # block == full extent (allowed)
    fits = [d for d in divs if d * bytes_per_row <= budget] or [divs[0]]
    pipelined = [d for d in fits if R // d >= min_steps]
    return max(pipelined) if pipelined else max(fits)


def _pick_lane_tile(hw, cap=4096):
    """Keep the output lane-dense: tile lanes only when HW is big and 128-divisible."""
    if hw <= cap or hw % 128 != 0:
        return hw
    best = 128
    for t in range(256, cap + 1, 128):
        if hw % t == 0:
            best = t
    return best


# ---------------------------------------------------------------------------
# Forward wrapper
# ---------------------------------------------------------------------------
def ca2b_forward(x, y, params):
    B, C, H, W = x.shape
    HW = H * W
    R = B * C
    itemsize = jnp.dtype(x.dtype).itemsize
    vmem_limit, stream_budget = _vmem_config()

    xf = x.reshape(R, HW)
    yf = y.reshape(R, HW)

    # ---- phase 1: adaptive avg-pool (1x1 ++ 3x3) as one shared (HW, 128) matmul ----
    pmat = params["pmat"]                                       # (HW, 128)
    p1_budget = max(stream_budget - pmat.size * 4, 4 << 20)     # pmat stays resident
    p1_row_bytes = 2 * (2 * HW * itemsize + PMAT_LANES * 4)     # dbl-buffered x, y, zp
    tr1 = _pick_row_tile(R, p1_row_bytes, p1_budget)
    zp = pl.pallas_call(
        _pool_kernel,
        out_shape=jax.ShapeDtypeStruct((R, PMAT_LANES), jnp.float32),
        grid=(R // tr1,),
        in_specs=[pl.BlockSpec((tr1, HW), lambda i: (i, 0)),
                  pl.BlockSpec((tr1, HW), lambda i: (i, 0)),
                  pl.BlockSpec((HW, PMAT_LANES), lambda i: (0, 0))],
        out_specs=pl.BlockSpec((tr1, PMAT_LANES), lambda i: (i, 0)),
        compiler_params=pltpu.CompilerParams(
            dimension_semantics=("parallel",), vmem_limit_bytes=vmem_limit),
    )(xf, yf, pmat)

    # ---- phase 2: tiny squeeze MLP in plain jnp (XLA fuses it; negligible FLOPs) ----
    zf = zp[:, :PP_D].reshape(B, C * PP_D)          # channel-major, matches .view(B,-1)
    z = jnp.maximum(jnp.dot(zf, params["w1f"], precision=_HIGHEST) + params["b1f"], 0.0)
    zx = jnp.dot(z, params["wx"], precision=_HIGHEST) + params["bx"]
    zy = jnp.dot(z, params["wy"], precision=_HIGHEST) + params["by"]
    w = jax.nn.softmax(jnp.stack([zx, zy], axis=1), axis=1)     # exact 2-way softmax
    wxr = w[:, 0].reshape(R, 1)                                  # keep f32 in the fuse
    wyr = w[:, 1].reshape(R, 1)

    # ---- phase 3: streaming weighted fuse, tiled + pipelined + megacore-parallel ----
    tl = _pick_lane_tile(HW)
    p3_row_bytes = 2 * (3 * tl * itemsize + 2 * 4)               # x, y, out + weights
    tr3 = _pick_row_tile(R, p3_row_bytes, stream_budget)
    out_flat = pl.pallas_call(
        _fuse_kernel,
        out_shape=jax.ShapeDtypeStruct((R, HW), x.dtype),
        grid=(R // tr3, HW // tl),
        in_specs=[pl.BlockSpec((tr3, tl), lambda i, j: (i, j)),
                  pl.BlockSpec((tr3, tl), lambda i, j: (i, j)),
                  pl.BlockSpec((tr3, 1), lambda i, j: (i, 0)),
                  pl.BlockSpec((tr3, 1), lambda i, j: (i, 0))],
        out_specs=pl.BlockSpec((tr3, tl), lambda i, j: (i, j)),
        compiler_params=pltpu.CompilerParams(
            dimension_semantics=("parallel", "parallel"),
            vmem_limit_bytes=vmem_limit),
    )(xf, yf, wxr, wyr)

    out = out_flat.reshape(B, C, H, W)
    return out, None, y                        # (out, None, d) with d = y.clone()


# ---------------------------------------------------------------------------
# Parameter init (BN folded into fc on the host; raw params kept for the reference)
# ---------------------------------------------------------------------------
def init_params(C, H, W, key, r=16):
    d = max(int(C / r), 32)
    pmat = jnp.asarray(_adaptive_pool_matrix(H, W))               # (HW, 128)
    ks = jax.random.split(key, 9)
    w1 = 0.1 * jax.random.normal(ks[0], (C * PP_D, d), jnp.float32)   # (in, out)
    gamma = 1.0 + 0.1 * jax.random.normal(ks[1], (d,), jnp.float32)
    beta = 0.1 * jax.random.normal(ks[2], (d,), jnp.float32)
    mean = 0.1 * jax.random.normal(ks[3], (d,), jnp.float32)
    var = jax.random.uniform(ks[4], (d,), jnp.float32, minval=0.5, maxval=1.5)
    wx = 0.1 * jax.random.normal(ks[5], (d, C), jnp.float32)
    bx = 0.1 * jax.random.normal(ks[6], (C,), jnp.float32)
    wy = 0.1 * jax.random.normal(ks[7], (d, C), jnp.float32)
    by = 0.1 * jax.random.normal(ks[8], (C,), jnp.float32)

    scale = gamma * jax.lax.rsqrt(var + BN_EPS)                   # inference-mode BN fold
    return {
        "pmat": pmat,
        "w1f": w1 * scale[None, :],
        "b1f": beta - mean * scale,
        "wx": wx, "bx": bx, "wy": wy, "by": by,
        # raw params kept for the pure-JAX reference
        "w1": w1, "gamma": gamma, "beta": beta,
        "running_mean": mean, "running_var": var,
    }


# ---------------------------------------------------------------------------
# Pure-JAX reference for verification
# ---------------------------------------------------------------------------
def ref_forward(x, y, params):
    U = x + y
    B, C, H, W = x.shape
    feats = []
    for s in PP_SIZE:
        rows = []
        for i in range(s):
            hs, he = (i * H) // s, -(-((i + 1) * H) // s)
            cols = []
            for j in range(s):
                ws, we = (j * W) // s, -(-((j + 1) * W) // s)
                cols.append(jnp.mean(U[:, :, hs:he, ws:we], axis=(2, 3)))
            rows.append(jnp.stack(cols, axis=-1))
        feats.append(jnp.stack(rows, axis=-2).reshape(B, C, s * s))
    z = jnp.concatenate(feats, axis=-1).reshape(B, -1)
    z = jnp.dot(z, params["w1"], precision=_HIGHEST)
    z = (z - params["running_mean"]) * params["gamma"] / jnp.sqrt(params["running_var"] + BN_EPS) \
        + params["beta"]
    z = jnp.maximum(z, 0.0)
    zx = jnp.dot(z, params["wx"], precision=_HIGHEST) + params["bx"]
    zy = jnp.dot(z, params["wy"], precision=_HIGHEST) + params["by"]
    w = jax.nn.softmax(jnp.stack([zx, zy], axis=1), axis=1)
    w_x, w_y = w[:, 0], w[:, 1]
    return x * w_x[:, :, None, None] + y * w_y[:, :, None, None]


if __name__ == "__main__":
    key = jax.random.PRNGKey(0)
    kx, ky, kp = jax.random.split(key, 3)
    B, C, H, W = 2, 4, 16, 16
    x = jax.random.normal(kx, (B, C, H, W), jnp.float32)
    y = jax.random.normal(ky, (B, C, H, W), jnp.float32)
    params = init_params(C, H, W, kp)

    out, none_out, d_out = ca2b_forward(x, y, params)
    out = jax.block_until_ready(out)

    ref = ref_forward(x, y, params)
    err = float(jnp.max(jnp.abs(out - ref)))
    assert jnp.allclose(out, ref, rtol=1e-3, atol=2e-3), f"max abs err {err}"
    assert none_out is None
    assert jnp.array_equal(d_out, y)
    print("KERNEL_OK")
</pallas_src>

<mosaic_0001>
module attributes {stable_mosaic.version = 11 : i64} {
  func.func @_pool_kernel(%arg0: i32, %arg1: memref<8x256xf32, #tpu.memory_space<vmem>>, %arg2: memref<8x256xf32, #tpu.memory_space<vmem>>, %arg3: memref<256x128xf32, #tpu.memory_space<vmem>>, %arg4: memref<8x128xf32, #tpu.memory_space<vmem>>) attributes {dimension_semantics = [#tpu.dimension_semantics<parallel>], iteration_bounds = array<i64: 1>, scalar_prefetch = 0 : i64, scratch_operands = 0 : i64, tpu.core_type = #tpu.core_type<tc>, window_params = [{transform_indices = @transform_0, window_bounds = array<i64: 8, 256>}, {transform_indices = @transform_1, window_bounds = array<i64: 8, 256>}, {pipeline_mode = #tpu.pipeline_mode<synchronous>, transform_indices = @transform_2, window_bounds = array<i64: 256, 128>}, {transform_indices = @transform_3, window_bounds = array<i64: 8, 128>}]} {
    %c0 = arith.constant 0 : index
    %c0_0 = arith.constant 0 : index
    %0 = vector.load %arg1[%c0, %c0_0] : memref<8x256xf32, #tpu.memory_space<vmem>>, vector<8x256xf32>
    %c0_1 = arith.constant 0 : index
    %c0_2 = arith.constant 0 : index
    %1 = vector.load %arg2[%c0_1, %c0_2] : memref<8x256xf32, #tpu.memory_space<vmem>>, vector<8x256xf32>
    %2 = arith.addf %0, %1 : vector<8x256xf32>
    %c0_3 = arith.constant 0 : index
    %c0_4 = arith.constant 0 : index
    %3 = vector.load %arg3[%c0_3, %c0_4] : memref<256x128xf32, #tpu.memory_space<vmem>>, vector<256x128xf32>
    %cst = arith.constant dense<0.000000e+00> : vector<8x128xf32>
    %4 = tpu.matmul %2, %3, %cst {dimension_numbers = #tpu.dot_dimension_numbers<[1], [0], [0], [1], [0, 0, 1, 1], [], []>, precision = #tpu.contract_precision<fp32>} : vector<8x256xf32>, vector<256x128xf32>, vector<8x128xf32> -> vector<8x128xf32>
    %c0_5 = arith.constant 0 : index
    %c0_6 = arith.constant 0 : index
    %5 = vector.load %arg4[%c0_5, %c0_6] : memref<8x128xf32, #tpu.memory_space<vmem>>, vector<8x128xf32>
    tpu.vector_store %arg4[%c0_5, %c0_6], %4 {strides = array<i32>} : memref<8x128xf32, #tpu.memory_space<vmem>>, vector<8x128xf32>,
    return
  }
  func.func @transform_0(%arg0: i32) -> (i32, i32) {
    %c0_i32 = arith.constant 0 : i32
    %c0_i32_0 = arith.constant 0 : i32
    return %arg0, %c0_i32 : i32, i32
  }
  func.func @transform_1(%arg0: i32) -> (i32, i32) {
    %c0_i32 = arith.constant 0 : i32
    %c0_i32_0 = arith.constant 0 : i32
    return %arg0, %c0_i32 : i32, i32
  }
  func.func @transform_2(%arg0: i32) -> (i32, i32) {
    %c0_i32 = arith.constant 0 : i32
    %c0_i32_0 = arith.constant 0 : i32
    %c0_i32_1 = arith.constant 0 : i32
    return %c0_i32, %c0_i32_0 : i32, i32
  }
  func.func @transform_3(%arg0: i32) -> (i32, i32) {
    %c0_i32 = arith.constant 0 : i32
    %c0_i32_0 = arith.constant 0 : i32
    return %arg0, %c0_i32 : i32, i32
  }
}

</mosaic_0001>

<bundles_post_ra>
// kernel: tpu_custom_call.1
= control target key start
LH: loop header
LB: loop body
LE: loop exit
PB: predicated region body
PF: predicated region fallthrough
CT: control target
= control target key end

     0   :  { %8 = vsyncpa [#allocation3], 0  ;;  %s1942_s0 = inlined_call_operand.hbm [shape: f32[8,256], index: 0, kind: input, shape index: {}]   ;;  %s1943_s1 = inlined_call_operand.hbm [shape: f32[8,256], index: 1, kind: input, shape index: {}]   ;;  %s1944_s2 = inlined_call_operand.hbm [shape: f32[256,128], index: 2, kind: input, shape index: {}]   ;;  %s1945_s3 = inlined_call_operand.hbm [shape: f32[8,128], index: 3, kind: output, shape index: {}]  }
   0x1   :  { %9 = vsyncpa [#allocation6], 0 }
   0x2   :  { %10 = vsyncpa [#allocation4], 0  ;;  %s1471_s12 = smov [#allocation5]   ;;  %s1472_s14 = smov [#allocation2]  }
   0x3   :  { %s27_s13 = sshll.u32 %s1471_s12, 4  ;;  %s17_s15 = sshll.u32 %s1472_s14, 4  ;;  %s28_s13 = int_to_ptr.vmem [resolvable:$true] %s27_s13  ;;  %s18_s15 = int_to_ptr.vmem [resolvable:$true] %s17_s15 }
   0x4   :  { %s1377_s18 = scalar_lea.hbm %s1943_s1, 256 }
   0x5   :  { %p1378_p0 = scmp.ne.s32.totalorder %s1943_s1, %s1377_s18  ;;  %p1381_p1 = scmp.lt.u32.totalorder %s1377_s18, %s1943_s1 }
   0x7   :  { %p1383_p2 = pnand %p1381_p1, %p1378_p0 }
   0x9   :  { %1386 = shalt.err (!%p1383_p2)
}
   0xa   :  { %s1387_s23 = scalar_lea.vmem %s28_s13, 256  ;;  %p1392_p4 = scmp.lt.s32.totalorder %s28_s13, %s28_s13 }
   0xb   :  { %p1388_p3 = scmp.ne.s32.totalorder %s28_s13, %s1387_s23  ;;  %p1393_p5 = scmp.lt.s32.totalorder %s1387_s23, %s1387_s23 }
   0xd   :  { %p1394_p6 = por %p1393_p5, %p1392_p4 }
   0xf   :  { %p1395_p7 = pnand %p1394_p6, %p1388_p3 }
  0x11   :  { %1398 = shalt.err (!%p1395_p7)
}
  0x12   :  { %30 = dma.hbm_to_vmem [thread:$0]  %s1943_s1, 256, %s28_s13, [#allocation6]  }
  0x13   :  { %s1399_s28 = scalar_lea.hbm %s1942_s0, 256 }
  0x14   :  { %p1400_p8 = scmp.ne.s32.totalorder %s1942_s0, %s1399_s28  ;;  %p1403_p9 = scmp.lt.u32.totalorder %s1399_s28, %s1942_s0 }
  0x16   :  { %p1405_p10 = pnand %p1403_p9, %p1400_p8 }
  0x18   :  { %1408 = shalt.err (!%p1405_p10)
}
  0x19   :  { %s1409_s6 = scalar_lea.vmem %s18_s15, 256  ;;  %p1414_p12 = scmp.lt.s32.totalorder %s18_s15, %s18_s15 }
  0x1a   :  { %p1410_p11 = scmp.ne.s32.totalorder %s18_s15, %s1409_s6  ;;  %p1415_p13 = scmp.lt.s32.totalorder %s1409_s6, %s1409_s6 }
  0x1c   :  { %p1416_p0 = por %p1415_p13, %p1414_p12 }
  0x1e   :  { %p1417_p1 = pnand %p1416_p0, %p1410_p11 }
  0x20   :  { %1420 = shalt.err (!%p1417_p1)
}
  0x21   :  { %20 = dma.hbm_to_vmem [thread:$0]  %s1942_s0, 256, %s18_s15, [#allocation3]  }
  0x22   :  { %s1473_s8 = smov [#allocation7]   ;;  %s1421_s12 = scalar_lea.hbm %s1944_s2, 4096 }
  0x23   :  { %s36_s9 = sshll.u32 %s1473_s8, 4  ;;  %p1422_p2 = scmp.ne.s32.totalorder %s1944_s2, %s1421_s12  ;;  %s37_s9 = int_to_ptr.vmem [resolvable:$true] %s36_s9 }
  0x24   :  { %p1425_p3 = scmp.lt.u32.totalorder %s1421_s12, %s1944_s2 }
  0x26   :  { %p1427_p4 = pnand %p1425_p3, %p1422_p2 }
  0x28   :  { %1430 = shalt.err (!%p1427_p4)
}
  0x29   :  { %s1431_s18 = scalar_lea.vmem %s37_s9, 4096  ;;  %p1436_p6 = scmp.lt.s32.totalorder %s37_s9, %s37_s9 }
  0x2a   :  { %p1432_p5 = scmp.ne.s32.totalorder %s37_s9, %s1431_s18  ;;  %p1437_p7 = scmp.lt.s32.totalorder %s1431_s18, %s1431_s18 }
  0x2c   :  { %p1438_p8 = por %p1437_p7, %p1436_p6 }
  0x2e   :  { %p1439_p9 = pnand %p1438_p8, %p1432_p5 }
  0x30   :  { %1442 = shalt.err (!%p1439_p9)
}
  0x31   :  { %s1474_s0 = smov 128   ;;  %s1475_s15 = smov 8  }
  0x32   :  { %42 = dma.hbm_to_vmem [thread:$0]  %s1944_s2, 4096, %s37_s9, [#allocation6], %s1474_s0, %s1474_s0, %s1475_s15  }
  0x33   :  { %1465 = dma.done.wait [#allocation3], 256  }
  0x34   :  { %1466 = vsyncadd [#allocation3], 4294967040 }
  0x35   :  { %1467 = dma.done.wait [#allocation6], 4352  }
  0x36   :  { %1468 = vsyncadd [#allocation6], 4294962944  ;;  %v74_v0 = vld [vmem:[#allocation7 + $0x80] sm:$0xff]  ;;  %v75_v1 = vld [vmem:[#allocation7 + $0x88] sm:$0xff]  ;;  %s1476_s2 = smov [#allocation8]  }
  0x37   :  { %v58_v2 = vld [vmem:[#allocation7] sm:$0xff]  ;;  %v139_v3 = vand.u32 4294901760, %v74_v0  ;;  %v142_v4 = vand.u32 4294901760, %v75_v1  ;;  %v59_v5 = vld [vmem:[#allocation7 + $0x8] sm:$0xff]  ;;  %v76_v7 = vld [vmem:[#allocation7 + $0x90] sm:$0xff]  ;;  %s959_s21 = sshll.u32 %s1476_s2, 4  ;;  %s960_s21 = int_to_ptr.vmem [resolvable:$true] %s959_s21 }
  0x38   :  { %v91_v6 = vand.u32 4294901760, %v58_v2  ;;  %v77_v8 = vld [vmem:[#allocation7 + $0x98] sm:$0xff]  ;;  %v94_v9 = vand.u32 4294901760, %v59_v5  ;;  %v145_v10 = vand.u32 4294901760, %v76_v7  ;;  %v60_v12 = vld [vmem:[#allocation7 + $0x10] sm:$0xff]  ;;  %v78_v18 = vld [vmem:[#allocation7 + $0xa0] sm:$0xff]  ;;  %p1448_p11 = scmp.lt.s32.totalorder %s960_s21, %s960_s21 }
  0x39   :  { %v148_v11 = vand.u32 4294901760, %v77_v8  ;;  %v61_v13 = vld [vmem:[#allocation7 + $0x18] sm:$0xff]  ;;  %v1533_v14 = vpack.c.bf16 %v142_v4, %v139_v3  ;;  %v97_v16 = vand.u32 4294901760, %v60_v12  ;;  %v79_v19 = vld [vmem:[#allocation7 + $0xa8] sm:$0xff]  ;;  %v62_v23 = vld [vmem:[#allocation7 + $0x20] sm:$0xff]  ;;  %v151_v29 = vand.u32 4294901760, %v78_v18 }
  0x3a   :  { %v1535_v15 = vsub.f32 %v58_v2, %v91_v6  ;;  %v100_v17 = vand.u32 4294901760, %v61_v13  ;;  %v1537_v20 = vpack.c.bf16 %v94_v9, %v91_v6  ;;  %v1539_v21 = vsub.f32 %v59_v5, %v94_v9  ;;  %v63_v24 = vld [vmem:[#allocation7 + $0x28] sm:$0xff]  ;;  %v80_v37 = vld [vmem:[#allocation7 + $0xb0] sm:$0xff]  ;;  %v81_v42 = vld [vmem:[#allocation7 + $0xb8] sm:$0xff]  ;;  %s1443_s22 = scalar_lea.vmem %s960_s21, 128 }
  0x3b   :  { %v1541_v22 = vpack.c.bf16 %v148_v11, %v145_v10  ;;  %1180 = vmatprep.subr.bf16.mxu0 %v1533_v14  ;;  %v1544_v25 = vsub.f32 %v76_v7, %v145_v10  ;;  %v1546_v26 = vsub.f32 %v77_v8, %v148_v11  ;;  %v1550_v28 = vsub.f32 %v60_v12, %v97_v16  ;;  %v64_v55 = vld [vmem:[#allocation7 + $0x30] sm:$0xff]  ;;  %v65_v56 = vld [vmem:[#allocation7 + $0x38] sm:$0xff]  ;;  %v82_v5 = vld [vmem:[#allocation7 + $0xc0] sm:$0xff]  ;;  %p1444_p10 = scmp.ne.s32.totalorder %s960_s21, %s1443_s22  ;;  %p1449_p12 = scmp.lt.s32.totalorder %s1443_s22, %s1443_s22 }
  0x3c   :  { %v1548_v27 = vpack.c.bf16 %v100_v17, %v97_v16  ;;  %1182 = vmatpush3.bf16.msra.mxu0 %v1537_v20  ;;  %v154_v30 = vand.u32 4294901760, %v79_v19  ;;  %v1553_v31 = vsub.f32 %v74_v0, %v139_v3  ;;  %v1555_v32 = vsub.f32 %v75_v1, %v142_v4  ;;  %v83_v6 = vld [vmem:[#allocation7 + $0xc8] sm:$0xff]  ;;  %v66_v11 = vld [vmem:[#allocation7 + $0x40] sm:$0xff] }
  0x3d   :  { %1184 = vmatprep.subr.bf16.mxu0 %v1541_v22  ;;  %v103_v33 = vand.u32 4294901760, %v62_v23  ;;  %v106_v34 = vand.u32 4294901760, %v63_v24  ;;  %v1961_v35 = vand.u32 4294901760, %v1535_v15  ;;  %v1960_v36 = vand.u32 4294901760, %v1539_v21  ;;  %p1450_p13 = por %p1449_p12, %p1448_p11 }
  0x3e   :  { %v1560_v38 = vsub.f32 %v61_v13, %v100_v17  ;;  %v1562_v39 = vpack.c.bf16 %v154_v30, %v151_v29  ;;  %v1564_v40 = vsub.f32 %v78_v18, %v151_v29  ;;  %v1965_v41 = vand.u32 4294901760, %v1553_v31  ;;  %v67_v29 = vld [vmem:[#allocation7 + $0x48] sm:$0xff] }
  0x3f   :  { %v1567_v43 = vsub.f32 %v79_v19, %v154_v30  ;;  %v1963_v44 = vand.u32 4294901760, %v1555_v32  ;;  %v1570_v45 = vpack.c.bf16 %v106_v34, %v103_v33  ;;  %v1572_v46 = vsub.f32 %v62_v23, %v103_v33  ;;  %p1451_p0 = pnand %p1450_p13, %p1444_p10 }
  0x40   :  { %1186 = vmatpush3.bf16.msra.mxu0 %v1548_v27  ;;  %v318_v47 = vsub.f32 %v1553_v31, %v1965_v41  ;;  %v206_v48 = vsub.f32 %v1535_v15, %v1961_v35  ;;  %v213_v49 = vsub.f32 %v1539_v21, %v1960_v36  ;;  %v157_v50 = vand.u32 4294901760, %v80_v37  ;;  %v53_v41 = vld [vmem:[#allocation2 + $0x8] sm:$0xff] }
  0x41   :  { %1188 = vmatprep.subr.bf16.mxu0 %v1562_v39  ;;  %v325_v51 = vsub.f32 %v1555_v32, %v1963_v44  ;;  %v160_v52 = vand.u32 4294901760, %v81_v42  ;;  %v1958_v53 = vand.u32 4294901760, %v1544_v25  ;;  %v1956_v54 = vand.u32 4294901760, %v1546_v26 }
  0x42   :  { %v319_v57 = vand.u32 4294901760, %v318_v47  ;;  %v1590_v58 = vsub.f32 %v63_v24, %v106_v34  ;;  %v207_v59 = vand.u32 4294901760, %v206_v48  ;;  %v214_v60 = vand.u32 4294901760, %v213_v49 }
  0x43   :  { %v326_v61 = vand.u32 4294901760, %v325_v51  ;;  %v1592_v62 = vpack.c.bf16 %v160_v52, %v157_v50  ;;  %v1594_v63 = vsub.f32 %v80_v37, %v157_v50  ;;  %v332_v0 = vsub.f32 %v1544_v25, %v1958_v53 }
  0x44   :  { %1190 = vmatpush3.bf16.msra.mxu0 %v1570_v45  ;;  %v1213_v1 = vpack.c.bf16 %v214_v60, %v207_v59  ;;  %v339_v2 = vsub.f32 %v1546_v26, %v1956_v54  ;;  %v109_v3 = vand.u32 4294901760, %v64_v55  ;;  %v112_v4 = vand.u32 4294901760, %v65_v56  ;;  %v85_v59 = vld [vmem:[#allocation7 + $0xd8] sm:$0xff] }
  0x45   :  { %v1211_v7 = vpack.c.bf16 %v326_v61, %v319_v57  ;;  %1192 = vmatprep.subr.bf16.mxu0 %v1592_v62  ;;  %v333_v8 = vand.u32 4294901760, %v332_v0  ;;  %v1955_v9 = vand.u32 4294901760, %v1550_v28  ;;  %v1953_v10 = vand.u32 4294901760, %v1560_v38  ;;  %v84_v57 = vld [vmem:[#allocation7 + $0xd0] sm:$0xff]  ;;  %v89_v54 = vld [vmem:[#allocation7 + $0xf8] sm:$0xff] }
  0x46   :  { %v1606_v12 = vsub.f32 %v81_v42, %v160_v52  ;;  %v340_v13 = vand.u32 4294901760, %v339_v2  ;;  %v1608_v16 = vpack.c.bf16 %v112_v4, %v109_v3  ;;  %v1610_v17 = vsub.f32 %v64_v55, %v109_v3 }
  0x47   :  { %1212 = vmatprep.subr.bf16.mxu1 %v1211_v7  ;;  %v220_v18 = vsub.f32 %v1550_v28, %v1955_v9  ;;  %v227_v19 = vsub.f32 %v1560_v38, %v1953_v10  ;;  %v163_v23 = vand.u32 4294901760, %v82_v5  ;;  %v166_v24 = vand.u32 4294901760, %v83_v6  ;;  %v88_v9 = vld [vmem:[#allocation7 + $0xf0] sm:$0xff] }
  0x48   :  { %1214 = vmatpush3.bf16.msra.mxu1 %v1213_v1  ;;  %v1215_v30 = vpack.c.bf16 %v340_v13, %v333_v8  ;;  %1194 = vmatpush3.bf16.msra.mxu0 %v1608_v16  ;;  %v1951_v33 = vand.u32 4294901760, %v1564_v40  ;;  %v1950_v34 = vand.u32 4294901760, %v1567_v43  ;;  %v115_v37 = vand.u32 4294901760, %v66_v11  ;;  %v68_v1 = vld [vmem:[#allocation7 + $0x50] sm:$0xff] }
  0x49   :  { %v1621_v42 = vsub.f32 %v65_v56, %v112_v4  ;;  %v221_v47 = vand.u32 4294901760, %v220_v18  ;;  %v228_v48 = vand.u32 4294901760, %v227_v19  ;;  %v1623_v49 = vpack.c.bf16 %v166_v24, %v163_v23  ;;  %v69_v18 = vld [vmem:[#allocation7 + $0x58] sm:$0xff] }
  0x4a   :  { %1216 = vmatprep.subr.bf16.mxu1 %v1215_v30  ;;  %v1625_v50 = vsub.f32 %v82_v5, %v163_v23  ;;  %v346_v51 = vsub.f32 %v1564_v40, %v1951_v33  ;;  %v353_v52 = vsub.f32 %v1567_v43, %v1950_v34  ;;  %v118_v55 = vand.u32 4294901760, %v67_v29 }
  0x4b   :  { %v1217_v56 = vpack.c.bf16 %v228_v48, %v221_v47  ;;  %1196 = vmatprep.subr.bf16.mxu0 %v1623_v49  ;;  %v1634_v60 = vsub.f32 %v83_v6, %v166_v24  ;;  %v1948_v61 = vand.u32 4294901760, %v1572_v46  ;;  %v1946_v0 = vand.u32 4294901760, %v1590_v58 }
  0x4c   :  { %v347_v2 = vand.u32 4294901760, %v346_v51  ;;  %v354_v3 = vand.u32 4294901760, %v353_v52  ;;  %v1638_v4 = vpack.c.bf16 %v118_v55, %v115_v37  ;;  %v1640_v5 = vsub.f32 %v66_v11, %v115_v37 }
  0x4d   :  { %1218 = vmatpush3.bf16.msra.mxu1 %v1217_v56  ;;  %v234_v7 = vsub.f32 %v1572_v46, %v1948_v61  ;;  %v241_v6 = vsub.f32 %v1590_v58, %v1946_v0  ;;  %v169_v8 = vand.u32 4294901760, %v84_v57  ;;  %v172_v13 = vand.u32 4294901760, %v85_v59  ;;  %v87_v0 = vld [vmem:[#allocation7 + $0xe8] sm:$0xff] }
  0x4e   :  { %v1219_v19 = vpack.c.bf16 %v354_v3, %v347_v2  ;;  %1198 = vmatpush3.bf16.msra.mxu0 %v1638_v4  ;;  %v1947_v23 = vand.u32 4294901760, %v1594_v63  ;;  %v1949_v11 = vand.u32 4294901760, %v1606_v12  ;;  %v121_v24 = vand.u32 4294901760, %v68_v1  ;;  %v86_v3 = vld [vmem:[#allocation7 + $0xe0] sm:$0xff] }
  0x4f   :  { %v1651_v30 = vsub.f32 %v67_v29, %v118_v55  ;;  %v235_v37 = vand.u32 4294901760, %v234_v7  ;;  %v242_v47 = vand.u32 4294901760, %v241_v6  ;;  %v1653_v48 = vpack.c.bf16 %v172_v13, %v169_v8  ;;  %v70_v6 = vld [vmem:[#allocation7 + $0x60] sm:$0xff] }
  0x50   :  { %1220 = vmatprep.subr.bf16.mxu1 %v1219_v19  ;;  %v1655_v51 = vsub.f32 %v84_v57, %v169_v8  ;;  %v360_v52 = vsub.f32 %v1594_v63, %v1947_v23  ;;  %v367_v56 = vsub.f32 %v1606_v12, %v1949_v11  ;;  %v124_v2 = vand.u32 4294901760, %v69_v18  ;;  %v71_v11 = vld [vmem:[#allocation7 + $0x68] sm:$0xff] }
  0x51   :  { %v1221_v29 = vpack.c.bf16 %v242_v47, %v235_v37  ;;  %1200 = vmatprep.subr.bf16.mxu0 %v1653_v48  ;;  %v1664_v55 = vsub.f32 %v85_v59, %v172_v13  ;;  %v1952_v7 = vand.u32 4294901760, %v1610_v17  ;;  %v1954_v57 = vand.u32 4294901760, %v1621_v42 }
  0x52   :  { %v361_v8 = vand.u32 4294901760, %v360_v52  ;;  %v368_v19 = vand.u32 4294901760, %v367_v56  ;;  %v1668_v23 = vpack.c.bf16 %v124_v2, %v121_v24  ;;  %v1670_v61 = vsub.f32 %v68_v1, %v121_v24 }
  0x53   :  { %1222 = vmatpush3.bf16.msra.mxu1 %v1221_v29  ;;  %v248_v37 = vsub.f32 %v1610_v17, %v1952_v7  ;;  %v255_v59 = vsub.f32 %v1621_v42, %v1954_v57  ;;  %v175_v13 = vand.u32 4294901760, %v86_v3  ;;  %v178_v47 = vand.u32 4294901760, %v87_v0 }
  0x54   :  { %1989 = vst [vmem:[#allocation12_spill] sm:$0xff] %v1668_v23  ;;  %v1223_v34 = vpack.c.bf16 %v368_v19, %v361_v8  ;;  %1202 = vmatpush3.bf16.msra.mxu0 %v1668_v23  ;;  %v1957_v52 = vand.u32 4294901760, %v1625_v50  ;;  %v1959_v1 = vand.u32 4294901760, %v1634_v60  ;;  %v127_v24 = vand.u32 4294901760, %v70_v6 }
  0x55   :  { %v1681_v56 = vsub.f32 %v69_v18, %v124_v2  ;;  %v249_v29 = vand.u32 4294901760, %v248_v37  ;;  %v256_v33 = vand.u32 4294901760, %v255_v59  ;;  %v1683_v7 = vpack.c.bf16 %v178_v47, %v175_v13  ;;  %v72_v37 = vld [vmem:[#allocation7 + $0x70] sm:$0xff] }
  0x56   :  { %1224 = vmatprep.subr.bf16.mxu1 %v1223_v34  ;;  %v1685_v10 = vsub.f32 %v86_v3, %v175_v13  ;;  %v374_v8 = vsub.f32 %v1625_v50, %v1957_v52  ;;  %v381_v19 = vsub.f32 %v1634_v60, %v1959_v1  ;;  %v130_v57 = vand.u32 4294901760, %v71_v11  ;;  %v73_v1 = vld [vmem:[#allocation7 + $0x78] sm:$0xff] }
  0x57   :  { %1990 = vst [vmem:[#allocation13_spill] sm:$0xff] %v1683_v7  ;;  %v1225_v18 = vpack.c.bf16 %v256_v33, %v249_v29  ;;  %1204 = vmatprep.subr.bf16.mxu0 %v1683_v7  ;;  %v1694_v2 = vsub.f32 %v87_v0, %v178_v47  ;;  %v1962_v34 = vand.u32 4294901760, %v1640_v5  ;;  %v1964_v3 = vand.u32 4294901760, %v1651_v30 }
  0x58   :  { %v375_v59 = vand.u32 4294901760, %v374_v8  ;;  %v382_v13 = vand.u32 4294901760, %v381_v19  ;;  %v1698_v52 = vpack.c.bf16 %v130_v57, %v127_v24  ;;  %v1700_v53 = vsub.f32 %v70_v6, %v127_v24 }
  0x59   :  { %1226 = vmatpush3.bf16.msra.mxu1 %v1225_v18  ;;  %v262_v33 = vsub.f32 %v1640_v5, %v1962_v34  ;;  %v269_v0 = vsub.f32 %v1651_v30, %v1964_v3  ;;  %v181_v47 = vand.u32 4294901760, %v88_v9  ;;  %v184_v29 = vand.u32 4294901760, %v89_v54 }
  0x5a   :  { %1991 = vst [vmem:[#allocation14_spill] sm:$0xff] %v1698_v52  ;;  %v1227_v36 = vpack.c.bf16 %v382_v13, %v375_v59  ;;  %1206 = vmatpush3.bf16.msra.mxu0 %v1698_v52  ;;  %v1968_v8 = vand.u32 4294901760, %v1655_v51  ;;  %v1973_v6 = vand.u32 4294901760, %v1664_v55  ;;  %v133_v24 = vand.u32 4294901760, %v72_v37  ;;  %v55_v52 = vld [vmem:[#allocation5 + $0x8] sm:$0xff] }
  0x5b   :  { %v1711_v19 = vsub.f32 %v71_v11, %v130_v57  ;;  %v263_v18 = vand.u32 4294901760, %v262_v33  ;;  %v270_v35 = vand.u32 4294901760, %v269_v0  ;;  %v1713_v34 = vpack.c.bf16 %v184_v29, %v181_v47  ;;  %v52_v33 = vld [vmem:[#allocation2] sm:$0xff]  ;;  %v54_v0 = vld [vmem:[#allocation5] sm:$0xff] }
  0x5c   :  { %1228 = vmatprep.subr.bf16.mxu1 %v1227_v36  ;;  %v1715_v44 = vsub.f32 %v88_v9, %v181_v47  ;;  %v388_v59 = vsub.f32 %v1655_v51, %v1968_v8  ;;  %v395_v13 = vsub.f32 %v1664_v55, %v1973_v6  ;;  %v136_v3 = vand.u32 4294901760, %v73_v1 }
  0x5d   :  { %1992 = vst [vmem:[#allocation15_spill] sm:$0xff] %v1713_v34  ;;  %v1229_v11 = vpack.c.bf16 %v270_v35, %v263_v18  ;;  %1208 = vmatprep.subr.bf16.mxu0 %v1713_v34  ;;  %v1724_v57 = vsub.f32 %v89_v54, %v184_v29  ;;  %v1981_v36 = vand.u32 4294901760, %v1670_v61  ;;  %v1976_v9 = vand.u32 4294901760, %v1681_v56 }
  0x5e   :  { %v389_v47 = vand.u32 4294901760, %v388_v59  ;;  %v396_v8 = vand.u32 4294901760, %v395_v13  ;;  %v1728_v7 = vpack.c.bf16 %v136_v3, %v133_v24  ;;  %v1730_v23 = vsub.f32 %v72_v37, %v133_v24 }
  0x5f   :  { %1230 = vmatpush3.bf16.msra.mxu1 %v1229_v11  ;;  %v276_v35 = vsub.f32 %v1670_v61, %v1981_v36  ;;  %v283_v54 = vsub.f32 %v1681_v56, %v1976_v9  ;;  %v57_v29 = vadd.f32 %v55_v52, %v53_v41  ;;  %v1977_v18 = vand.u32 4294901760, %v1685_v10 }
  0x60   :  { %1993 = vst [vmem:[#allocation16_spill] sm:$0xff] %v1728_v7  ;;  %v1231_v6 = vpack.c.bf16 %v396_v8, %v389_v47  ;;  %1210 = vmatpush3.bf16.msra.mxu0 %v1728_v7  ;;  %v1978_v59 = vand.u32 4294901760, %v1694_v2  ;;  %v1243_v37 = vpack.c.bf16 %v1555_v32, %v1553_v31  ;;  %v56_v24 = vadd.f32 %v54_v0, %v52_v33 }
  0x61   :  { %v277_v13 = vand.u32 4294901760, %v276_v35  ;;  %v284_v11 = vand.u32 4294901760, %v283_v54  ;;  %v1743_v34 = vand.u32 4294901760, %v57_v29  ;;  %v402_v9 = vsub.f32 %v1685_v10, %v1977_v18 }
  0x62   :  { %1232 = vmatprep.subr.bf16.mxu1 %v1231_v6  ;;  %v409_v41 = vsub.f32 %v1694_v2, %v1978_v59  ;;  %1244 = vmatprep.subr.bf16.mxu0 %v1243_v37  ;;  %v1751_v52 = vand.u32 4294901760, %v56_v24  ;;  %v1979_v8 = vand.u32 4294901760, %v1700_v53  ;;  %v1980_v33 = vand.u32 4294901760, %v1711_v19 }
  0x63   :  { %1994 = vst [vmem:[#allocation17_spill] sm:$0xff] %v1743_v34  ;;  %v1755_v0 = vsub.f32 %v73_v1, %v136_v3  ;;  %v1233_v47 = vpack.c.bf16 %v284_v11, %v277_v13  ;;  %v1758_v35 = vsub.f32 %v57_v29, %v1743_v34  ;;  %v403_v54 = vand.u32 4294901760, %v402_v9  ;;  %427 = vmatprep.mubr.f32.mxu1 %v1743_v34 }
  0x64   :  { %v410_v6 = vand.u32 4294901760, %v409_v41  ;;  %v1762_v18 = vsub.f32 %v56_v24, %v1751_v52  ;;  %v290_v37 = vsub.f32 %v1700_v53, %v1979_v8  ;;  %v297_v1 = vsub.f32 %v1711_v19, %v1980_v33 }
  0x65   :  { %1234 = vmatpush3.bf16.msra.mxu1 %v1233_v47  ;;  %v188_v3 = vand.u32 4294901760, %v1758_v35  ;;  %v1984_v29 = vand.u32 4294901760, %v1715_v44  ;;  %v1985_v9 = vand.u32 4294901760, %v1724_v57  ;;  %v303_v33 = vand.u32 4294901760, %v1730_v23 }
  0x66   :  { %v1235_v13 = vpack.c.bf16 %v410_v6, %v403_v54  ;;  %v1988_v11 = vand.u32 4294901760, %v1762_v18  ;;  %v291_v24 = vand.u32 4294901760, %v290_v37  ;;  %v298_v41 = vand.u32 4294901760, %v297_v1 }
  0x67   :  { %v189_v59 = vsub.f32 %v1758_v35, %v188_v3  ;;  %v416_v8 = vsub.f32 %v1715_v44, %v1984_v29  ;;  %v423_v47 = vsub.f32 %v1724_v57, %v1985_v9  ;;  %v1245_v37 = vpack.c.bf16 %v1539_v21, %v1535_v15 }
  0x68   :  { %1236 = vmatprep.subr.bf16.mxu1 %v1235_v13  ;;  %v195_v54 = vsub.f32 %v1762_v18, %v1988_v11  ;;  %v1237_v6 = vpack.c.bf16 %v298_v41, %v291_v24  ;;  %v310_v1 = vand.u32 4294901760, %v1755_v0  ;;  %v304_v9 = vsub.f32 %v1730_v23, %v303_v33 }
  0x69   :  { %v190_v36 = vand.u32 4294901760, %v189_v59  ;;  %v417_v7 = vand.u32 4294901760, %v416_v8  ;;  %v424_v29 = vand.u32 4294901760, %v423_v47  ;;  %v1247_v13 = vpack.c.bf16 %v1546_v26, %v1544_v25 }
  0x6a   :  { %v196_v34 = vand.u32 4294901760, %v195_v54  ;;  %1238 = vmatpush3.bf16.msra.mxu1 %v1237_v6  ;;  %v311_v24 = vsub.f32 %v1755_v0, %v310_v1  ;;  %v305_v11 = vand.u32 4294901760, %v304_v9  ;;  %v1249_v8 = vpack.c.bf16 %v1560_v38, %v1550_v28 }
  0x6b   :  { %191 = vmatprep.mubr.f32.mxu0 %v190_v36  ;;  %v1239_v41 = vpack.c.bf16 %v424_v29, %v417_v7  ;;  %v1251_v54 = vpack.c.bf16 %v1567_v43, %v1564_v40  ;;  %v1253_v6 = vpack.c.bf16 %v1590_v58, %v1572_v46  ;;  %v1995_v7 = vand.u32 4294901760, %v1553_v31 }
  0x6c   :  { %197 = vmatmul.mubr.f32.vlgmr.msra.gmra.mrb[0].mxu0 %v196_v34  ;;  %v312_v59 = vand.u32 4294901760, %v311_v24  ;;  %v1996_v34 = vand.u32 4294901760, %v1555_v32  ;;  %v1997_v29 = vand.u32 4294901760, %v1535_v15  ;;  %v1998_v9 = vand.u32 4294901760, %v1539_v21 }
  0x6d   :  { %1246 = vmatpush3.bf16.msra.mxu0 %v1245_v37  ;;  %1240 = vmatprep.subr.bf16.mxu1 %v1239_v41  ;;  %v2001_v41 = vand.u32 4294901760, %v1550_v28  ;;  %v2003_v31 = vand.u32 4294901760, %v1564_v40  ;;  %v2004_v32 = vand.u32 4294901760, %v1567_v43  ;;  %v2005_v15 = vand.u32 4294901760, %v1572_v46 }
  0x6e   :  { %1248 = vmatprep.subr.bf16.mxu0 %v1247_v13  ;;  %v1241_v47 = vpack.c.bf16 %v312_v59, %v305_v11  ;;  %564 = vmatprep.mubr.f32.mxu0 %v1758_v35  ;;  %v1307_v36 = vpack.c.bf16 %v1996_v34, %v1995_v7  ;;  %v1309_v37 = vpack.c.bf16 %v1998_v9, %v1997_v29  ;;  %v1999_v11 = vand.u32 4294901760, %v1544_v25 }
  0x6f   :  { %v2000_v13 = vand.u32 4294901760, %v1546_v26  ;;  %v2002_v59 = vand.u32 4294901760, %v1560_v38  ;;  %v1315_v7 = vpack.c.bf16 %v2004_v32, %v2003_v31  ;;  %v2006_v21 = vand.u32 4294901760, %v1590_v58 }
  0x70   :  { %1242 = vmatpush3.bf16.msra.mxu1 %v1241_v47  ;;  %v2007_v25 = vand.u32 4294901760, %v1594_v63  ;;  %v2008_v26 = vand.u32 4294901760, %v1606_v12  ;;  %v2009_v28 = vand.u32 4294901760, %v1610_v17  ;;  %v2010_v38 = vand.u32 4294901760, %v1621_v42 }
  0x71   :  { %v1311_v24 = vpack.c.bf16 %v2000_v13, %v1999_v11  ;;  %v1313_v35 = vpack.c.bf16 %v2002_v59, %v2001_v41  ;;  %v1317_v34 = vpack.c.bf16 %v2006_v21, %v2005_v15  ;;  %1250 = vmatpush3.bf16.msra.mxu0 %v1249_v8  ;;  %1276 = vmatprep.subr.bf16.mxu1 %v1533_v14  ;;  %v2011_v40 = vand.u32 4294901760, %v1625_v50 }
  0x72   :  { %v1319_v29 = vpack.c.bf16 %v2008_v26, %v2007_v25  ;;  %v1321_v47 = vpack.c.bf16 %v2010_v38, %v2009_v28  ;;  %v2012_v43 = vand.u32 4294901760, %v1634_v60  ;;  %v2013_v58 = vand.u32 4294901760, %v1640_v5  ;;  %1252 = vmatprep.subr.bf16.mxu0 %v1251_v54 }
  0x73   :  { %v2014_v9 = vand.u32 4294901760, %v1651_v30  ;;  %v2015_v13 = vand.u32 4294901760, %v1655_v51  ;;  %v2016_v41 = vand.u32 4294901760, %v1664_v55  ;;  %v1255_v8 = vpack.c.bf16 %v1606_v12, %v1594_v63  ;;  %429 = vmatmul.mubr.f32.vlgmr.msra.gmra.mrb[0].mxu1 %v1751_v52 }
  0x74   :  { %v1323_v46 = vpack.c.bf16 %v2012_v43, %v2011_v40  ;;  %v2017_v31 = vand.u32 4294901760, %v1670_v61  ;;  %v2018_v32 = vand.u32 4294901760, %v1681_v56  ;;  %v2019_v21 = vand.u32 4294901760, %v1700_v53  ;;  %1278 = vmatpush3.bf16.msra.mxu1 %v1537_v20  ;;  %671 = vmatprep.mubr.f32.mxu1 %v188_v3 }
  0x75   :  { %v1325_v11 = vpack.c.bf16 %v2014_v9, %v2013_v58  ;;  %v1327_v59 = vpack.c.bf16 %v2016_v41, %v2015_v13  ;;  %v2020_v25 = vand.u32 4294901760, %v1711_v19  ;;  %1254 = vmatpush3.bf16.msra.mxu0 %v1253_v6  ;;  %1280 = vmatprep.subr.bf16.mxu1 %v1541_v22  ;;  %v1257_v63 = vpack.c.bf16 %v1621_v42, %v1610_v17 }
  0x76   :  { %v1329_v15 = vpack.c.bf16 %v2018_v32, %v2017_v31  ;;  %1256 = vmatprep.subr.bf16.mxu0 %v1255_v8  ;;  %v1259_v12 = vpack.c.bf16 %v1634_v60, %v1625_v50  ;;  %v1261_v54 = vpack.c.bf16 %v1651_v30, %v1640_v5  ;;  %v1263_v3 = vpack.c.bf16 %v1664_v55, %v1655_v51  ;;  %v2021_v5 = vld [vmem:[#allocation12_spill] sm:$0xff]  ;;  %v2022_v30 = vld [vmem:[#allocation13_spill] sm:$0xff]  ;;  %v2024_v51 = vld [vmem:[#allocation15_spill] sm:$0xff] }
  0x77   :  { %v1858_v26 = vpack.c.bf16 %v2020_v25, %v2019_v21  ;;  %v1265_v17 = vpack.c.bf16 %v1681_v56, %v1670_v61  ;;  %v1267_v42 = vpack.c.bf16 %v1694_v2, %v1685_v10  ;;  %v1269_v50 = vpack.c.bf16 %v1711_v19, %v1700_v53  ;;  %v2023_v53 = vld [vmem:[#allocation14_spill] sm:$0xff]  ;;  %v2025_v55 = vld [vmem:[#allocation17_spill] sm:$0xff]  ;;  %v2026_v56 = vld [vmem:[#allocation16_spill] sm:$0xff] }
  0x78   :  { %1282 = vmatpush3.bf16.msra.mxu1 %v1548_v27  ;;  %v1271_v60 = vpack.c.bf16 %v1724_v57, %v1715_v44  ;;  %v1273_v61 = vpack.c.bf16 %v1755_v0, %v1730_v23  ;;  %v2027_v19 = vand.u32 4294901760, %v1762_v18 }
  0x79   :  { %1258 = vmatpush3.bf16.msra.mxu0 %v1257_v63  ;;  %1284 = vmatprep.subr.bf16.mxu1 %v1562_v39 }
  0x7a   :  { %1260 = vmatprep.subr.bf16.mxu0 %v1259_v12 }
  0x7c   :  { %1286 = vmatpush3.bf16.msra.mxu1 %v1570_v45 }
  0x7d   :  { %1262 = vmatpush3.bf16.msra.mxu0 %v1261_v54  ;;  %1288 = vmatprep.subr.bf16.mxu1 %v1592_v62 }
  0x7e   :  { %1264 = vmatprep.subr.bf16.mxu0 %v1263_v3 }
  0x80   :  { %1290 = vmatpush3.bf16.msra.mxu1 %v1608_v16 }
  0x81   :  { %1266 = vmatpush3.bf16.msra.mxu0 %v1265_v17  ;;  %1292 = vmatprep.subr.bf16.mxu1 %v1623_v49 }
  0x82   :  { %1268 = vmatprep.subr.bf16.mxu0 %v1267_v42 }
  0x84   :  { %1294 = vmatpush3.bf16.msra.mxu1 %v1638_v4 }
  0x85   :  { %1270 = vmatpush3.bf16.msra.mxu0 %v1269_v50  ;;  %1296 = vmatprep.subr.bf16.mxu1 %v1653_v48 }
  0x86   :  { %1272 = vmatprep.subr.bf16.mxu0 %v1271_v60 }
  0x88   :  { %1298 = vmatpush3.bf16.msra.mxu1 %v2021_v5 }
  0x89   :  { %1274 = vmatpush3.bf16.msra.mxu0 %v1273_v61  ;;  %1300 = vmatprep.subr.bf16.mxu1 %v2022_v30 }
  0x8a   :  { %1308 = vmatprep.subr.bf16.mxu0 %v1307_v36 }
  0x8c   :  { %567 = vmatmul.mubr.f32.vlgmr.msra.gmra.mrb[2].mxu0 %v1762_v18  ;;  %1302 = vmatpush3.bf16.msra.mxu1 %v2023_v53 }
  0x8d   :  { %1310 = vmatpush3.bf16.msra.mxu0 %v1309_v37  ;;  %1304 = vmatprep.subr.bf16.mxu1 %v2024_v51 }
  0x8e   :  { %1312 = vmatprep.subr.bf16.mxu0 %v1311_v24  ;;  %841 = vmatprep.mubr.f32.mxu0 %v2025_v55 }
  0x90   :  { %1306 = vmatpush3.bf16.msra.mxu1 %v2026_v56 }
  0x91   :  { %1314 = vmatpush3.bf16.msra.mxu0 %v1313_v35  ;;  %1340 = vmatprep.subr.bf16.mxu1 %v1533_v14  ;;  %v2028_v14 = vand.u32 4294901760, %v1685_v10 }
  0x92   :  { %1316 = vmatprep.subr.bf16.mxu0 %v1315_v7 }
  0x93   :  { %675 = vmatmul.mubr.f32.vlgmr.msra.gmra.mrb[2].mxu1 %v2027_v19 }
  0x94   :  { %1342 = vmatpush3.bf16.msra.mxu1 %v1537_v20  ;;  %945 = vmatprep.mubr.f32.mxu1 %v2025_v55  ;;  %v2029_v20 = vand.u32 4294901760, %v1694_v2 }
  0x95   :  { %1318 = vmatpush3.bf16.msra.mxu0 %v1317_v34  ;;  %1344 = vmatprep.subr.bf16.mxu1 %v1541_v22  ;;  %v2030_v22 = vand.u32 4294901760, %v1715_v44 }
  0x96   :  { %1320 = vmatprep.subr.bf16.mxu0 %v1319_v29  ;;  %v1331_v18 = vpack.c.bf16 %v2029_v20, %v2028_v14 }
  0x98   :  { %1346 = vmatpush3.bf16.msra.mxu1 %v1548_v27  ;;  %v2031_v27 = vand.u32 4294901760, %v1724_v57 }
  0x99   :  { %1322 = vmatpush3.bf16.msra.mxu0 %v1321_v47  ;;  %1348 = vmatprep.subr.bf16.mxu1 %v1562_v39 }
  0x9a   :  { %1324 = vmatprep.subr.bf16.mxu0 %v1323_v46  ;;  %v1335_v39 = vpack.c.bf16 %v2031_v27, %v2030_v22 }
  0x9c   :  { %1350 = vmatpush3.bf16.msra.mxu1 %v1570_v45  ;;  %v1337_v45 = vpack.c.bf16 %v310_v1, %v303_v33 }
  0x9d   :  { %1326 = vmatpush3.bf16.msra.mxu0 %v1325_v11  ;;  %1352 = vmatprep.subr.bf16.mxu1 %v1592_v62 }
  0x9e   :  { %1328 = vmatprep.subr.bf16.mxu0 %v1327_v59 }
  0xa0   :  { %1354 = vmatpush3.bf16.msra.mxu1 %v1608_v16 }
  0xa1   :  { %1330 = vmatpush3.bf16.msra.mxu0 %v1329_v15  ;;  %1356 = vmatprep.subr.bf16.mxu1 %v1623_v49 }
  0xa2   :  { %1332 = vmatprep.subr.bf16.mxu0 %v1331_v18 }
  0xa4   :  { %1358 = vmatpush3.bf16.msra.mxu1 %v1638_v4 }
  0xa5   :  { %1334 = vmatpush3.bf16.msra.mxu0 %v1858_v26  ;;  %1360 = vmatprep.subr.bf16.mxu1 %v1653_v48 }
  0xa6   :  { %1336 = vmatprep.subr.bf16.mxu0 %v1335_v39 }
  0xa8   :  { %1362 = vmatpush3.bf16.msra.mxu1 %v2021_v5 }
  0xa9   :  { %1338 = vmatpush3.bf16.msra.mxu0 %v1337_v45  ;;  %1364 = vmatprep.subr.bf16.mxu1 %v2022_v30 }
  0xac   :  { %843 = vmatmul.mubr.f32.vlgmr.msra.gmra.mrb[4].mxu0 %v1751_v52  ;;  %1366 = vmatpush3.bf16.msra.mxu1 %v2023_v53 }
  0xad   :  { %1368 = vmatprep.subr.bf16.mxu1 %v2024_v51 }
  0xb0   :  { %1370 = vmatpush3.bf16.msra.mxu1 %v2026_v56 }
  0xb3   :  { %947 = vmatmul.mubr.f32.vlgmr.msra.gmra.mrb[4].mxu1 %v1751_v52 }
 0x13f   :  { %v1001_v44 = vpop.f32.mrb[0].mxu0 }
 0x140   :  { %v1002_v62 = vpop.f32.mrb[1].mxu0 }
 0x141   :  { %v1003_v10 = vadd.f32 %v1002_v62, %v1001_v44 }
 0x146   :  { %v1036_v16 = vpop.f32.mrb[0].mxu1 }
 0x147   :  { %v1037_v49 = vpop.f32.mrb[1].mxu1 }
 0x148   :  { %v1038_v4 = vadd.f32 %v1037_v49, %v1036_v16 }
 0x14a   :  { %v431_v23 = vadd.f32 %v1038_v4, %v1003_v10 }
 0x15f   :  { %v1071_v48 = vpop.f32.mrb[2].mxu0 }
 0x160   :  { %v1072_v2 = vpop.f32.mrb[3].mxu0 }
 0x161   :  { %v1073_v57 = vadd.f32 %v1072_v2, %v1071_v48 }
 0x163   :  { %v569_v33 = vadd.f32 %v1073_v57, %v431_v23 }
 0x166   :  { %v1106_v0 = vpop.f32.mrb[2].mxu1 }
 0x167   :  { %v1107_v1 = vpop.f32.mrb[3].mxu1 }
 0x168   :  { %v1108_v6 = vadd.f32 %v1107_v1, %v1106_v0 }
 0x16a   :  { %v677_v36 = vadd.f32 %v1108_v6, %v569_v33 }
 0x17f   :  { %v1141_v37 = vpop.f32.mrb[4].mxu0 }
 0x180   :  { %v1142_v24 = vpop.f32.mrb[5].mxu0 }
 0x181   :  { %v1143_v35 = vadd.f32 %v1142_v24, %v1141_v37 }
 0x183   :  { %v845_v7 = vadd.f32 %v1143_v35, %v677_v36 }
 0x186   :  { %v1176_v52 = vpop.f32.mrb[4].mxu1 }
 0x187   :  { %v1177_v34 = vpop.f32.mrb[5].mxu1 }
 0x188   :  { %v1178_v29 = vadd.f32 %v1177_v34, %v1176_v52 }
 0x18a   :  { %v949_v28 = vadd.f32 %v1178_v29, %v845_v7 }
 0x18c   :  { %952 = vst [vmem:[#allocation8] sm:$0xff] %v949_v28 }
 0x18d   :  { %1454 = shalt.err (!%p1451_p0)
}
 0x18e   :  { %s1455_s25 = scalar_lea.hbm %s1945_s3, 128 }
 0x18f   :  { %p1456_p1 = scmp.ne.s32.totalorder %s1945_s3, %s1455_s25  ;;  %p1459_p2 = scmp.lt.u32.totalorder %s1455_s25, %s1945_s3 }
 0x191   :  { %p1461_p3 = pnand %p1459_p2, %p1456_p1 }
 0x193   :  { %1464 = shalt.err (!%p1461_p3)
}
 0x194   :  { %962 = dma.vmem_to_hbm [thread:$0]  %s960_s21, 128, %s1945_s3, [#allocation4]  }
 0x195   :  { %1469 = dma.done.wait [#allocation4], 128  }
 0x196   :  { %1470 = vsyncadd [#allocation4], 4294967168 }
 0x197   :  { %966 = vsyncpa [#allocation3], 1 }
 0x198   :  { %967 = vsyncpa [#allocation6], 1 }
 0x199   :  { %968 = vsyncpa [#allocation4], 1 }

</bundles_post_ra>
